<compile_context>
chip_gen: v7x
topology: tpu7x:2x2x1
jax: 0.10.0
libtpu: 0.0.40
codegen_flags: <defaults>
</compile_context>

<pallas_src>
import functools

import jax
import jax.numpy as jnp
from jax.experimental import pallas as pl
from jax.experimental.pallas import tpu as pltpu


def _lstm_fc_kernel(x_ref, wih_ref, whh_ref, b_ref, wfc_ref, bfc_ref, out_ref,
                    *, seq_len, batch_pad, hidden_size):
    """Whole LSTM (T steps) + final Linear in one kernel invocation.

    x_ref:   (T*Bp, I)  time-major, batch-padded, flattened input
    wih_ref: (I, 4H)    W_ih^T
    whh_ref: (H, 4H)    W_hh^T
    b_ref:   (1, 4H)    b_ih + b_hh
    wfc_ref: (H, I)     W_fc^T
    bfc_ref: (1, I)     b_fc
    out_ref: (Bp, I)
    """
    T, Bp, H = seq_len, batch_pad, hidden_size

    # Hoist weight loads out of the recurrence.
    wih = wih_ref[...]
    whh = whh_ref[...]
    bias = b_ref[...]

    # Time-parallel input projection (off the serial critical path):
    # one (T*Bp, I) x (I, 4H) MXU push instead of T tiny ones.
    gates_x = jnp.dot(x_ref[...], wih,
                      preferred_element_type=jnp.float32) + bias  # (T*Bp, 4H)

    h = jnp.zeros((Bp, H), jnp.float32)
    c = jnp.zeros((Bp, H), jnp.float32)

    # Fully-unrolled recurrence; per step only the (Bp,H)x(H,4H) matmul and the
    # elementwise gate math are serial.
    for t in range(T):
        g = gates_x[t * Bp:(t + 1) * Bp, :] + jnp.dot(
            h, whh, preferred_element_type=jnp.float32)            # (Bp, 4H)
        i_g = jax.nn.sigmoid(g[:, 0 * H:1 * H])
        f_g = jax.nn.sigmoid(g[:, 1 * H:2 * H])
        g_g = jnp.tanh(g[:, 2 * H:3 * H])
        o_g = jax.nn.sigmoid(g[:, 3 * H:4 * H])
        c = f_g * c + i_g * g_g
        h = o_g * jnp.tanh(c)

    # Final linear layer on the last-timestep hidden state (straight-line code,
    # no predicated branch).
    y = jnp.dot(h, wfc_ref[...], preferred_element_type=jnp.float32) + bfc_ref[...]
    out_ref[...] = y.astype(out_ref.dtype)


def bubble_sort_lstm_forward(x, params):
    """x: (B, T, I) float32 (batch-first, like PyTorch). Returns (B, I)."""
    B, T, I = x.shape
    if T < 1:
        raise ValueError("BubbleSortLSTM forward requires T >= 1")

    w_ih, w_hh, b_ih, b_hh, w_fc, b_fc = (
        params["w_ih"], params["w_hh"], params["b_ih"], params["b_hh"],
        params["w_fc"], params["b_fc"],
    )
    H = w_hh.shape[1]

    # Pad batch to the f32 sublane quantum (8). Padded rows carry zeros; the
    # recurrence is row-independent so they never contaminate real rows.
    Bp = ((B + 7) // 8) * 8

    # Wrapper-side glue: pad, go time-major, flatten to (T*Bp, I), pre-transpose
    # weights, fold biases.
    x_pad = jnp.pad(x, ((0, Bp - B), (0, 0), (0, 0)))
    x2d = jnp.transpose(x_pad, (1, 0, 2)).reshape(T * Bp, I)   # (T*Bp, I)
    wih_t = jnp.transpose(w_ih)                                # (I, 4H)
    whh_t = jnp.transpose(w_hh)                                # (H, 4H)
    bias = (b_ih + b_hh).reshape(1, 4 * H)                     # (1, 4H)
    wfc_t = jnp.transpose(w_fc)                                # (H, I)
    bfc = b_fc.reshape(1, I)                                   # (1, I)

    kernel = functools.partial(
        _lstm_fc_kernel, seq_len=T, batch_pad=Bp, hidden_size=H)

    out_pad = pl.pallas_call(
        kernel,
        out_shape=jax.ShapeDtypeStruct((Bp, I), jnp.float32),
        grid=(1,),
        in_specs=[
            pl.BlockSpec((T * Bp, I), lambda i: (0, 0)),   # x (full, one DMA)
            pl.BlockSpec((I, 4 * H), lambda i: (0, 0)),    # W_ih^T
            pl.BlockSpec((H, 4 * H), lambda i: (0, 0)),    # W_hh^T
            pl.BlockSpec((1, 4 * H), lambda i: (0, 0)),    # bias
            pl.BlockSpec((H, I), lambda i: (0, 0)),        # W_fc^T
            pl.BlockSpec((1, I), lambda i: (0, 0)),        # b_fc
        ],
        out_specs=pl.BlockSpec((Bp, I), lambda i: (0, 0)),
        compiler_params=pltpu.CompilerParams(
            dimension_semantics=("arbitrary",)),   # single step; recurrence is in-kernel
    )(x2d, wih_t, whh_t, bias, wfc_t, bfc)

    return out_pad[:B]


def _reference_forward(x, params):
    """Pure-JAX reference replicating PyTorch LSTM + Linear semantics."""
    B, T, I = x.shape
    H = params["w_hh"].shape[1]

    def step(carry, x_t):
        h, c = carry
        gates = (x_t @ params["w_ih"].T + params["b_ih"]
                 + h @ params["w_hh"].T + params["b_hh"])
        i_g = jax.nn.sigmoid(gates[:, 0 * H:1 * H])
        f_g = jax.nn.sigmoid(gates[:, 1 * H:2 * H])
        g_g = jnp.tanh(gates[:, 2 * H:3 * H])
        o_g = jax.nn.sigmoid(gates[:, 3 * H:4 * H])
        c = f_g * c + i_g * g_g
        h = o_g * jnp.tanh(c)
        return (h, c), None

    h0 = jnp.zeros((B, H), jnp.float32)
    c0 = jnp.zeros((B, H), jnp.float32)
    (h_last, _), _ = jax.lax.scan(step, (h0, c0), jnp.transpose(x, (1, 0, 2)))
    return h_last @ params["w_fc"].T + params["b_fc"]


def init_params(key, input_size, hidden_size):
    """Deterministic init mirroring PyTorch shapes (uniform(-1/sqrt(H), 1/sqrt(H)))."""
    k = 1.0 / jnp.sqrt(jnp.float32(hidden_size))
    keys = jax.random.split(key, 6)
    u = lambda kk, shape: jax.random.uniform(kk, shape, jnp.float32, -k, k)
    return {
        "w_ih": u(keys[0], (4 * hidden_size, input_size)),
        "w_hh": u(keys[1], (4 * hidden_size, hidden_size)),
        "b_ih": u(keys[2], (4 * hidden_size,)),
        "b_hh": u(keys[3], (4 * hidden_size,)),
        "w_fc": u(keys[4], (input_size, hidden_size)),
        "b_fc": u(keys[5], (input_size,)),
    }


if __name__ == "__main__":
    B, T, I, H = 2, 8, 16, 32
    key = jax.random.PRNGKey(0)
    kx, kp = jax.random.split(key)
    x = jax.random.normal(kx, (B, T, I), jnp.float32)
    params = init_params(kp, I, H)

    out = bubble_sort_lstm_forward(x, params)
    out = jax.block_until_ready(out)

    ref = jax.block_until_ready(_reference_forward(x, params))
    assert out.shape == (B, I)
    assert jnp.max(jnp.abs(out - ref)) < 1e-4, "kernel mismatch vs reference"

    print("KERNEL_OK")
</pallas_src>

<mosaic_0001>
module attributes {stable_mosaic.version = 11 : i64} {
  func.func @_lstm_fc_kernel(%arg0: i32, %arg1: memref<64x16xf32, #tpu.memory_space<vmem>>, %arg2: memref<16x128xf32, #tpu.memory_space<vmem>>, %arg3: memref<32x128xf32, #tpu.memory_space<vmem>>, %arg4: memref<1x128xf32, #tpu.memory_space<vmem>>, %arg5: memref<32x16xf32, #tpu.memory_space<vmem>>, %arg6: memref<1x16xf32, #tpu.memory_space<vmem>>, %arg7: memref<8x16xf32, #tpu.memory_space<vmem>>) attributes {dimension_semantics = [#tpu.dimension_semantics<arbitrary>], iteration_bounds = array<i64: 1>, scalar_prefetch = 0 : i64, scratch_operands = 0 : i64, tpu.core_type = #tpu.core_type<tc>, window_params = [{pipeline_mode = #tpu.pipeline_mode<synchronous>, transform_indices = @transform_0, window_bounds = array<i64: 64, 16>}, {pipeline_mode = #tpu.pipeline_mode<synchronous>, transform_indices = @transform_1, window_bounds = array<i64: 16, 128>}, {pipeline_mode = #tpu.pipeline_mode<synchronous>, transform_indices = @transform_2, window_bounds = array<i64: 32, 128>}, {pipeline_mode = #tpu.pipeline_mode<synchronous>, transform_indices = @transform_3, window_bounds = array<i64: 1, 128>}, {pipeline_mode = #tpu.pipeline_mode<synchronous>, transform_indices = @transform_4, window_bounds = array<i64: 32, 16>}, {pipeline_mode = #tpu.pipeline_mode<synchronous>, transform_indices = @transform_5, window_bounds = array<i64: 1, 16>}, {pipeline_mode = #tpu.pipeline_mode<synchronous>, transform_indices = @transform_6, window_bounds = array<i64: 8, 16>}]} {
    %c0 = arith.constant 0 : index
    %c0_0 = arith.constant 0 : index
    %0 = vector.load %arg2[%c0, %c0_0] : memref<16x128xf32, #tpu.memory_space<vmem>>, vector<16x128xf32>
    %c0_1 = arith.constant 0 : index
    %c0_2 = arith.constant 0 : index
    %1 = vector.load %arg3[%c0_1, %c0_2] : memref<32x128xf32, #tpu.memory_space<vmem>>, vector<32x128xf32>
    %c0_3 = arith.constant 0 : index
    %c0_4 = arith.constant 0 : index
    %2 = vector.load %arg4[%c0_3, %c0_4] : memref<1x128xf32, #tpu.memory_space<vmem>>, vector<1x128xf32>
    %c0_5 = arith.constant 0 : index
    %c0_6 = arith.constant 0 : index
    %3 = vector.load %arg1[%c0_5, %c0_6] : memref<64x16xf32, #tpu.memory_space<vmem>>, vector<64x16xf32>
    %cst = arith.constant dense<0.000000e+00> : vector<64x128xf32>
    %4 = tpu.matmul %3, %0, %cst {dimension_numbers = #tpu.dot_dimension_numbers<[1], [0], [0], [1], [0, 0, 1, 1], [], []>} : vector<64x16xf32>, vector<16x128xf32>, vector<64x128xf32> -> vector<64x128xf32>
    %5 = vector.broadcast %2 : vector<1x128xf32> to vector<64x128xf32>
    %6 = arith.addf %4, %5 : vector<64x128xf32>
    %cst_7 = arith.constant 0.000000e+00 : f32
    %7 = vector.broadcast %cst_7 : f32 to vector<8x32xf32>
    %cst_8 = arith.constant 0.000000e+00 : f32
    %8 = vector.broadcast %cst_8 : f32 to vector<8x32xf32>
    %9 = vector.extract_strided_slice %6 {offsets = [0, 0], sizes = [8, 128], strides = [1, 1]} : vector<64x128xf32> to vector<8x128xf32>
    %cst_9 = arith.constant dense<0.000000e+00> : vector<8x128xf32>
    %10 = tpu.matmul %7, %1, %cst_9 {dimension_numbers = #tpu.dot_dimension_numbers<[1], [0], [0], [1], [0, 0, 1, 1], [], []>} : vector<8x32xf32>, vector<32x128xf32>, vector<8x128xf32> -> vector<8x128xf32>
    %11 = arith.addf %9, %10 : vector<8x128xf32>
    %12 = vector.extract_strided_slice %11 {offsets = [0, 0], sizes = [8, 32], strides = [1, 1]} : vector<8x128xf32> to vector<8x32xf32>
    %13 = arith.negf %12 : vector<8x32xf32>
    %14 = math.exp %13 : vector<8x32xf32>
    %cst_10 = arith.constant 1.000000e+00 : f32
    %15 = vector.broadcast %cst_10 : f32 to vector<8x32xf32>
    %16 = arith.addf %15, %14 : vector<8x32xf32>
    %17 = arith.divf %15, %16 : vector<8x32xf32>
    %18 = vector.extract_strided_slice %11 {offsets = [0, 32], sizes = [8, 32], strides = [1, 1]} : vector<8x128xf32> to vector<8x32xf32>
    %19 = arith.negf %18 : vector<8x32xf32>
    %20 = math.exp %19 : vector<8x32xf32>
    %cst_11 = arith.constant 1.000000e+00 : f32
    %21 = vector.broadcast %cst_11 : f32 to vector<8x32xf32>
    %22 = arith.addf %21, %20 : vector<8x32xf32>
    %23 = arith.divf %21, %22 : vector<8x32xf32>
    %24 = vector.extract_strided_slice %11 {offsets = [0, 64], sizes = [8, 32], strides = [1, 1]} : vector<8x128xf32> to vector<8x32xf32>
    %25 = math.tanh %24 : vector<8x32xf32>
    %26 = vector.extract_strided_slice %11 {offsets = [0, 96], sizes = [8, 32], strides = [1, 1]} : vector<8x128xf32> to vector<8x32xf32>
    %27 = arith.negf %26 : vector<8x32xf32>
    %28 = math.exp %27 : vector<8x32xf32>
    %cst_12 = arith.constant 1.000000e+00 : f32
    %29 = vector.broadcast %cst_12 : f32 to vector<8x32xf32>
    %30 = arith.addf %29, %28 : vector<8x32xf32>
    %31 = arith.divf %29, %30 : vector<8x32xf32>
    %32 = arith.mulf %23, %8 : vector<8x32xf32>
    %33 = arith.mulf %17, %25 : vector<8x32xf32>
    %34 = arith.addf %32, %33 : vector<8x32xf32>
    %35 = math.tanh %34 : vector<8x32xf32>
    %36 = arith.mulf %31, %35 : vector<8x32xf32>
    %37 = vector.extract_strided_slice %6 {offsets = [8, 0], sizes = [8, 128], strides = [1, 1]} : vector<64x128xf32> to vector<8x128xf32>
    %cst_13 = arith.constant dense<0.000000e+00> : vector<8x128xf32>
    %38 = tpu.matmul %36, %1, %cst_13 {dimension_numbers = #tpu.dot_dimension_numbers<[1], [0], [0], [1], [0, 0, 1, 1], [], []>} : vector<8x32xf32>, vector<32x128xf32>, vector<8x128xf32> -> vector<8x128xf32>
    %39 = arith.addf %37, %38 : vector<8x128xf32>
    %40 = vector.extract_strided_slice %39 {offsets = [0, 0], sizes = [8, 32], strides = [1, 1]} : vector<8x128xf32> to vector<8x32xf32>
    %41 = arith.negf %40 : vector<8x32xf32>
    %42 = math.exp %41 : vector<8x32xf32>
    %cst_14 = arith.constant 1.000000e+00 : f32
    %43 = vector.broadcast %cst_14 : f32 to vector<8x32xf32>
    %44 = arith.addf %43, %42 : vector<8x32xf32>
    %45 = arith.divf %43, %44 : vector<8x32xf32>
    %46 = vector.extract_strided_slice %39 {offsets = [0, 32], sizes = [8, 32], strides = [1, 1]} : vector<8x128xf32> to vector<8x32xf32>
    %47 = arith.negf %46 : vector<8x32xf32>
    %48 = math.exp %47 : vector<8x32xf32>
    %cst_15 = arith.constant 1.000000e+00 : f32
    %49 = vector.broadcast %cst_15 : f32 to vector<8x32xf32>
    %50 = arith.addf %49, %48 : vector<8x32xf32>
    %51 = arith.divf %49, %50 : vector<8x32xf32>
    %52 = vector.extract_strided_slice %39 {offsets = [0, 64], sizes = [8, 32], strides = [1, 1]} : vector<8x128xf32> to vector<8x32xf32>
    %53 = math.tanh %52 : vector<8x32xf32>
    %54 = vector.extract_strided_slice %39 {offsets = [0, 96], sizes = [8, 32], strides = [1, 1]} : vector<8x128xf32> to vector<8x32xf32>
    %55 = arith.negf %54 : vector<8x32xf32>
    %56 = math.exp %55 : vector<8x32xf32>
    %cst_16 = arith.constant 1.000000e+00 : f32
    %57 = vector.broadcast %cst_16 : f32 to vector<8x32xf32>
    %58 = arith.addf %57, %56 : vector<8x32xf32>
    %59 = arith.divf %57, %58 : vector<8x32xf32>
    %60 = arith.mulf %51, %34 : vector<8x32xf32>
    %61 = arith.mulf %45, %53 : vector<8x32xf32>
    %62 = arith.addf %60, %61 : vector<8x32xf32>
    %63 = math.tanh %62 : vector<8x32xf32>
    %64 = arith.mulf %59, %63 : vector<8x32xf32>
    %65 = vector.extract_strided_slice %6 {offsets = [16, 0], sizes = [8, 128], strides = [1, 1]} : vector<64x128xf32> to vector<8x128xf32>
    %cst_17 = arith.constant dense<0.000000e+00> : vector<8x128xf32>
    %66 = tpu.matmul %64, %1, %cst_17 {dimension_numbers = #tpu.dot_dimension_numbers<[1], [0], [0], [1], [0, 0, 1, 1], [], []>} : vector<8x32xf32>, vector<32x128xf32>, vector<8x128xf32> -> vector<8x128xf32>
    %67 = arith.addf %65, %66 : vector<8x128xf32>
    %68 = vector.extract_strided_slice %67 {offsets = [0, 0], sizes = [8, 32], strides = [1, 1]} : vector<8x128xf32> to vector<8x32xf32>
    %69 = arith.negf %68 : vector<8x32xf32>
    %70 = math.exp %69 : vector<8x32xf32>
    %cst_18 = arith.constant 1.000000e+00 : f32
    %71 = vector.broadcast %cst_18 : f32 to vector<8x32xf32>
    %72 = arith.addf %71, %70 : vector<8x32xf32>
    %73 = arith.divf %71, %72 : vector<8x32xf32>
    %74 = vector.extract_strided_slice %67 {offsets = [0, 32], sizes = [8, 32], strides = [1, 1]} : vector<8x128xf32> to vector<8x32xf32>
    %75 = arith.negf %74 : vector<8x32xf32>
    %76 = math.exp %75 : vector<8x32xf32>
    %cst_19 = arith.constant 1.000000e+00 : f32
    %77 = vector.broadcast %cst_19 : f32 to vector<8x32xf32>
    %78 = arith.addf %77, %76 : vector<8x32xf32>
    %79 = arith.divf %77, %78 : vector<8x32xf32>
    %80 = vector.extract_strided_slice %67 {offsets = [0, 64], sizes = [8, 32], strides = [1, 1]} : vector<8x128xf32> to vector<8x32xf32>
    %81 = math.tanh %80 : vector<8x32xf32>
    %82 = vector.extract_strided_slice %67 {offsets = [0, 96], sizes = [8, 32], strides = [1, 1]} : vector<8x128xf32> to vector<8x32xf32>
    %83 = arith.negf %82 : vector<8x32xf32>
    %84 = math.exp %83 : vector<8x32xf32>
    %cst_20 = arith.constant 1.000000e+00 : f32
    %85 = vector.broadcast %cst_20 : f32 to vector<8x32xf32>
    %86 = arith.addf %85, %84 : vector<8x32xf32>
    %87 = arith.divf %85, %86 : vector<8x32xf32>
    %88 = arith.mulf %79, %62 : vector<8x32xf32>
    %89 = arith.mulf %73, %81 : vector<8x32xf32>
    %90 = arith.addf %88, %89 : vector<8x32xf32>
    %91 = math.tanh %90 : vector<8x32xf32>
    %92 = arith.mulf %87, %91 : vector<8x32xf32>
    %93 = vector.extract_strided_slice %6 {offsets = [24, 0], sizes = [8, 128], strides = [1, 1]} : vector<64x128xf32> to vector<8x128xf32>
    %cst_21 = arith.constant dense<0.000000e+00> : vector<8x128xf32>
    %94 = tpu.matmul %92, %1, %cst_21 {dimension_numbers = #tpu.dot_dimension_numbers<[1], [0], [0], [1], [0, 0, 1, 1], [], []>} : vector<8x32xf32>, vector<32x128xf32>, vector<8x128xf32> -> vector<8x128xf32>
    %95 = arith.addf %93, %94 : vector<8x128xf32>
    %96 = vector.extract_strided_slice %95 {offsets = [0, 0], sizes = [8, 32], strides = [1, 1]} : vector<8x128xf32> to vector<8x32xf32>
    %97 = arith.negf %96 : vector<8x32xf32>
    %98 = math.exp %97 : vector<8x32xf32>
    %cst_22 = arith.constant 1.000000e+00 : f32
    %99 = vector.broadcast %cst_22 : f32 to vector<8x32xf32>
    %100 = arith.addf %99, %98 : vector<8x32xf32>
    %101 = arith.divf %99, %100 : vector<8x32xf32>
    %102 = vector.extract_strided_slice %95 {offsets = [0, 32], sizes = [8, 32], strides = [1, 1]} : vector<8x128xf32> to vector<8x32xf32>
    %103 = arith.negf %102 : vector<8x32xf32>
    %104 = math.exp %103 : vector<8x32xf32>
    %cst_23 = arith.constant 1.000000e+00 : f32
    %105 = vector.broadcast %cst_23 : f32 to vector<8x32xf32>
    %106 = arith.addf %105, %104 : vector<8x32xf32>
    %107 = arith.divf %105, %106 : vector<8x32xf32>
    %108 = vector.extract_strided_slice %95 {offsets = [0, 64], sizes = [8, 32], strides = [1, 1]} : vector<8x128xf32> to vector<8x32xf32>
    %109 = math.tanh %108 : vector<8x32xf32>
    %110 = vector.extract_strided_slice %95 {offsets = [0, 96], sizes = [8, 32], strides = [1, 1]} : vector<8x128xf32> to vector<8x32xf32>
    %111 = arith.negf %110 : vector<8x32xf32>
    %112 = math.exp %111 : vector<8x32xf32>
    %cst_24 = arith.constant 1.000000e+00 : f32
    %113 = vector.broadcast %cst_24 : f32 to vector<8x32xf32>
    %114 = arith.addf %113, %112 : vector<8x32xf32>
    %115 = arith.divf %113, %114 : vector<8x32xf32>
    %116 = arith.mulf %107, %90 : vector<8x32xf32>
    %117 = arith.mulf %101, %109 : vector<8x32xf32>
    %118 = arith.addf %116, %117 : vector<8x32xf32>
    %119 = math.tanh %118 : vector<8x32xf32>
    %120 = arith.mulf %115, %119 : vector<8x32xf32>
    %121 = vector.extract_strided_slice %6 {offsets = [32, 0], sizes = [8, 128], strides = [1, 1]} : vector<64x128xf32> to vector<8x128xf32>
    %cst_25 = arith.constant dense<0.000000e+00> : vector<8x128xf32>
    %122 = tpu.matmul %120, %1, %cst_25 {dimension_numbers = #tpu.dot_dimension_numbers<[1], [0], [0], [1], [0, 0, 1, 1], [], []>} : vector<8x32xf32>, vector<32x128xf32>, vector<8x128xf32> -> vector<8x128xf32>
    %123 = arith.addf %121, %122 : vector<8x128xf32>
    %124 = vector.extract_strided_slice %123 {offsets = [0, 0], sizes = [8, 32], strides = [1, 1]} : vector<8x128xf32> to vector<8x32xf32>
    %125 = arith.negf %124 : vector<8x32xf32>
    %126 = math.exp %125 : vector<8x32xf32>
    %cst_26 = arith.constant 1.000000e+00 : f32
    %127 = vector.broadcast %cst_26 : f32 to vector<8x32xf32>
    %128 = arith.addf %127, %126 : vector<8x32xf32>
    %129 = arith.divf %127, %128 : vector<8x32xf32>
    %130 = vector.extract_strided_slice %123 {offsets = [0, 32], sizes = [8, 32], strides = [1, 1]} : vector<8x128xf32> to vector<8x32xf32>
    %131 = arith.negf %130 : vector<8x32xf32>
    %132 = math.exp %131 : vector<8x32xf32>
    %cst_27 = arith.constant 1.000000e+00 : f32
    %133 = vector.broadcast %cst_27 : f32 to vector<8x32xf32>
    %134 = arith.addf %133, %132 : vector<8x32xf32>
    %135 = arith.divf %133, %134 : vector<8x32xf32>
    %136 = vector.extract_strided_slice %123 {offsets = [0, 64], sizes = [8, 32], strides = [1, 1]} : vector<8x128xf32> to vector<8x32xf32>
    %137 = math.tanh %136 : vector<8x32xf32>
    %138 = vector.extract_strided_slice %123 {offsets = [0, 96], sizes = [8, 32], strides = [1, 1]} : vector<8x128xf32> to vector<8x32xf32>
    %139 = arith.negf %138 : vector<8x32xf32>
    %140 = math.exp %139 : vector<8x32xf32>
    %cst_28 = arith.constant 1.000000e+00 : f32
    %141 = vector.broadcast %cst_28 : f32 to vector<8x32xf32>
    %142 = arith.addf %141, %140 : vector<8x32xf32>
    %143 = arith.divf %141, %142 : vector<8x32xf32>
    %144 = arith.mulf %135, %118 : vector<8x32xf32>
    %145 = arith.mulf %129, %137 : vector<8x32xf32>
    %146 = arith.addf %144, %145 : vector<8x32xf32>
    %147 = math.tanh %146 : vector<8x32xf32>
    %148 = arith.mulf %143, %147 : vector<8x32xf32>
    %149 = vector.extract_strided_slice %6 {offsets = [40, 0], sizes = [8, 128], strides = [1, 1]} : vector<64x128xf32> to vector<8x128xf32>
    %cst_29 = arith.constant dense<0.000000e+00> : vector<8x128xf32>
    %150 = tpu.matmul %148, %1, %cst_29 {dimension_numbers = #tpu.dot_dimension_numbers<[1], [0], [0], [1], [0, 0, 1, 1], [], []>} : vector<8x32xf32>, vector<32x128xf32>, vector<8x128xf32> -> vector<8x128xf32>
    %151 = arith.addf %149, %150 : vector<8x128xf32>
    %152 = vector.extract_strided_slice %151 {offsets = [0, 0], sizes = [8, 32], strides = [1, 1]} : vector<8x128xf32> to vector<8x32xf32>
    %153 = arith.negf %152 : vector<8x32xf32>
    %154 = math.exp %153 : vector<8x32xf32>
    %cst_30 = arith.constant 1.000000e+00 : f32
    %155 = vector.broadcast %cst_30 : f32 to vector<8x32xf32>
    %156 = arith.addf %155, %154 : vector<8x32xf32>
    %157 = arith.divf %155, %156 : vector<8x32xf32>
    %158 = vector.extract_strided_slice %151 {offsets = [0, 32], sizes = [8, 32], strides = [1, 1]} : vector<8x128xf32> to vector<8x32xf32>
    %159 = arith.negf %158 : vector<8x32xf32>
    %160 = math.exp %159 : vector<8x32xf32>
    %cst_31 = arith.constant 1.000000e+00 : f32
    %161 = vector.broadcast %cst_31 : f32 to vector<8x32xf32>
    %162 = arith.addf %161, %160 : vector<8x32xf32>
    %163 = arith.divf %161, %162 : vector<8x32xf32>
    %164 = vector.extract_strided_slice %151 {offsets = [0, 64], sizes = [8, 32], strides = [1, 1]} : vector<8x128xf32> to vector<8x32xf32>
    %165 = math.tanh %164 : vector<8x32xf32>
    %166 = vector.extract_strided_slice %151 {offsets = [0, 96], sizes = [8, 32], strides = [1, 1]} : vector<8x128xf32> to vector<8x32xf32>
    %167 = arith.negf %166 : vector<8x32xf32>
    %168 = math.exp %167 : vector<8x32xf32>
    %cst_32 = arith.constant 1.000000e+00 : f32
    %169 = vector.broadcast %cst_32 : f32 to vector<8x32xf32>
    %170 = arith.addf %169, %168 : vector<8x32xf32>
    %171 = arith.divf %169, %170 : vector<8x32xf32>
    %172 = arith.mulf %163, %146 : vector<8x32xf32>
    %173 = arith.mulf %157, %165 : vector<8x32xf32>
    %174 = arith.addf %172, %173 : vector<8x32xf32>
    %175 = math.tanh %174 : vector<8x32xf32>
    %176 = arith.mulf %171, %175 : vector<8x32xf32>
    %177 = vector.extract_strided_slice %6 {offsets = [48, 0], sizes = [8, 128], strides = [1, 1]} : vector<64x128xf32> to vector<8x128xf32>
    %cst_33 = arith.constant dense<0.000000e+00> : vector<8x128xf32>
    %178 = tpu.matmul %176, %1, %cst_33 {dimension_numbers = #tpu.dot_dimension_numbers<[1], [0], [0], [1], [0, 0, 1, 1], [], []>} : vector<8x32xf32>, vector<32x128xf32>, vector<8x128xf32> -> vector<8x128xf32>
    %179 = arith.addf %177, %178 : vector<8x128xf32>
    %180 = vector.extract_strided_slice %179 {offsets = [0, 0], sizes = [8, 32], strides = [1, 1]} : vector<8x128xf32> to vector<8x32xf32>
    %181 = arith.negf %180 : vector<8x32xf32>
    %182 = math.exp %181 : vector<8x32xf32>
    %cst_34 = arith.constant 1.000000e+00 : f32
    %183 = vector.broadcast %cst_34 : f32 to vector<8x32xf32>
    %184 = arith.addf %183, %182 : vector<8x32xf32>
    %185 = arith.divf %183, %184 : vector<8x32xf32>
    %186 = vector.extract_strided_slice %179 {offsets = [0, 32], sizes = [8, 32], strides = [1, 1]} : vector<8x128xf32> to vector<8x32xf32>
    %187 = arith.negf %186 : vector<8x32xf32>
    %188 = math.exp %187 : vector<8x32xf32>
    %cst_35 = arith.constant 1.000000e+00 : f32
    %189 = vector.broadcast %cst_35 : f32 to vector<8x32xf32>
    %190 = arith.addf %189, %188 : vector<8x32xf32>
    %191 = arith.divf %189, %190 : vector<8x32xf32>
    %192 = vector.extract_strided_slice %179 {offsets = [0, 64], sizes = [8, 32], strides = [1, 1]} : vector<8x128xf32> to vector<8x32xf32>
    %193 = math.tanh %192 : vector<8x32xf32>
    %194 = vector.extract_strided_slice %179 {offsets = [0, 96], sizes = [8, 32], strides = [1, 1]} : vector<8x128xf32> to vector<8x32xf32>
    %195 = arith.negf %194 : vector<8x32xf32>
    %196 = math.exp %195 : vector<8x32xf32>
    %cst_36 = arith.constant 1.000000e+00 : f32
    %197 = vector.broadcast %cst_36 : f32 to vector<8x32xf32>
    %198 = arith.addf %197, %196 : vector<8x32xf32>
    %199 = arith.divf %197, %198 : vector<8x32xf32>
    %200 = arith.mulf %191, %174 : vector<8x32xf32>
    %201 = arith.mulf %185, %193 : vector<8x32xf32>
    %202 = arith.addf %200, %201 : vector<8x32xf32>
    %203 = math.tanh %202 : vector<8x32xf32>
    %204 = arith.mulf %199, %203 : vector<8x32xf32>
    %205 = vector.extract_strided_slice %6 {offsets = [56, 0], sizes = [8, 128], strides = [1, 1]} : vector<64x128xf32> to vector<8x128xf32>
    %cst_37 = arith.constant dense<0.000000e+00> : vector<8x128xf32>
    %206 = tpu.matmul %204, %1, %cst_37 {dimension_numbers = #tpu.dot_dimension_numbers<[1], [0], [0], [1], [0, 0, 1, 1], [], []>} : vector<8x32xf32>, vector<32x128xf32>, vector<8x128xf32> -> vector<8x128xf32>
    %207 = arith.addf %205, %206 : vector<8x128xf32>
    %208 = vector.extract_strided_slice %207 {offsets = [0, 0], sizes = [8, 32], strides = [1, 1]} : vector<8x128xf32> to vector<8x32xf32>
    %209 = arith.negf %208 : vector<8x32xf32>
    %210 = math.exp %209 : vector<8x32xf32>
    %cst_38 = arith.constant 1.000000e+00 : f32
    %211 = vector.broadcast %cst_38 : f32 to vector<8x32xf32>
    %212 = arith.addf %211, %210 : vector<8x32xf32>
    %213 = arith.divf %211, %212 : vector<8x32xf32>
    %214 = vector.extract_strided_slice %207 {offsets = [0, 32], sizes = [8, 32], strides = [1, 1]} : vector<8x128xf32> to vector<8x32xf32>
    %215 = arith.negf %214 : vector<8x32xf32>
    %216 = math.exp %215 : vector<8x32xf32>
    %cst_39 = arith.constant 1.000000e+00 : f32
    %217 = vector.broadcast %cst_39 : f32 to vector<8x32xf32>
    %218 = arith.addf %217, %216 : vector<8x32xf32>
    %219 = arith.divf %217, %218 : vector<8x32xf32>
    %220 = vector.extract_strided_slice %207 {offsets = [0, 64], sizes = [8, 32], strides = [1, 1]} : vector<8x128xf32> to vector<8x32xf32>
    %221 = math.tanh %220 : vector<8x32xf32>
    %222 = vector.extract_strided_slice %207 {offsets = [0, 96], sizes = [8, 32], strides = [1, 1]} : vector<8x128xf32> to vector<8x32xf32>
    %223 = arith.negf %222 : vector<8x32xf32>
    %224 = math.exp %223 : vector<8x32xf32>
    %cst_40 = arith.constant 1.000000e+00 : f32
    %225 = vector.broadcast %cst_40 : f32 to vector<8x32xf32>
    %226 = arith.addf %225, %224 : vector<8x32xf32>
    %227 = arith.divf %225, %226 : vector<8x32xf32>
    %228 = arith.mulf %219, %202 : vector<8x32xf32>
    %229 = arith.mulf %213, %221 : vector<8x32xf32>
    %230 = arith.addf %228, %229 : vector<8x32xf32>
    %231 = math.tanh %230 : vector<8x32xf32>
    %232 = arith.mulf %227, %231 : vector<8x32xf32>
    %c0_41 = arith.constant 0 : index
    %c0_42 = arith.constant 0 : index
    %233 = vector.load %arg5[%c0_41, %c0_42] : memref<32x16xf32, #tpu.memory_space<vmem>>, vector<32x16xf32>
    %cst_43 = arith.constant dense<0.000000e+00> : vector<8x16xf32>
    %234 = tpu.matmul %232, %233, %cst_43 {dimension_numbers = #tpu.dot_dimension_numbers<[1], [0], [0], [1], [0, 0, 1, 1], [], []>} : vector<8x32xf32>, vector<32x16xf32>, vector<8x16xf32> -> vector<8x16xf32>
    %c0_44 = arith.constant 0 : index
    %c0_45 = arith.constant 0 : index
    %235 = vector.load %arg6[%c0_44, %c0_45] : memref<1x16xf32, #tpu.memory_space<vmem>>, vector<1x16xf32>
    %236 = vector.broadcast %235 : vector<1x16xf32> to vector<8x16xf32>
    %237 = arith.addf %234, %236 : vector<8x16xf32>
    %c0_46 = arith.constant 0 : index
    %c0_47 = arith.constant 0 : index
    %238 = vector.load %arg7[%c0_46, %c0_47] : memref<8x16xf32, #tpu.memory_space<vmem>>, vector<8x16xf32>
    tpu.vector_store %arg7[%c0_46, %c0_47], %237 {strides = array<i32>} : memref<8x16xf32, #tpu.memory_space<vmem>>, vector<8x16xf32>,
    return
  }
  func.func @transform_0(%arg0: i32) -> (i32, i32) {
    %c0_i32 = arith.constant 0 : i32
    %c0_i32_0 = arith.constant 0 : i32
    %c0_i32_1 = arith.constant 0 : i32
    return %c0_i32, %c0_i32_0 : i32, i32
  }
  func.func @transform_1(%arg0: i32) -> (i32, i32) {
    %c0_i32 = arith.constant 0 : i32
    %c0_i32_0 = arith.constant 0 : i32
    %c0_i32_1 = arith.constant 0 : i32
    return %c0_i32, %c0_i32_0 : i32, i32
  }
  func.func @transform_2(%arg0: i32) -> (i32, i32) {
    %c0_i32 = arith.constant 0 : i32
    %c0_i32_0 = arith.constant 0 : i32
    %c0_i32_1 = arith.constant 0 : i32
    return %c0_i32, %c0_i32_0 : i32, i32
  }
  func.func @transform_3(%arg0: i32) -> (i32, i32) {
    %c0_i32 = arith.constant 0 : i32
    %c0_i32_0 = arith.constant 0 : i32
    %c0_i32_1 = arith.constant 0 : i32
    return %c0_i32, %c0_i32_0 : i32, i32
  }
  func.func @transform_4(%arg0: i32) -> (i32, i32) {
    %c0_i32 = arith.constant 0 : i32
    %c0_i32_0 = arith.constant 0 : i32
    %c0_i32_1 = arith.constant 0 : i32
    return %c0_i32, %c0_i32_0 : i32, i32
  }
  func.func @transform_5(%arg0: i32) -> (i32, i32) {
    %c0_i32 = arith.constant 0 : i32
    %c0_i32_0 = arith.constant 0 : i32
    %c0_i32_1 = arith.constant 0 : i32
    return %c0_i32, %c0_i32_0 : i32, i32
  }
  func.func @transform_6(%arg0: i32) -> (i32, i32) {
    %c0_i32 = arith.constant 0 : i32
    %c0_i32_0 = arith.constant 0 : i32
    %c0_i32_1 = arith.constant 0 : i32
    return %c0_i32, %c0_i32_0 : i32, i32
  }
}

</mosaic_0001>

<bundles_post_ra>
// kernel: tpu_custom_call.1
= control target key start
LH: loop header
LB: loop body
LE: loop exit
PB: predicated region body
PF: predicated region fallthrough
CT: control target
= control target key end

     0   :  { %vm45_vm0 = vcmask 130048   ;;  %v1423_v3 = vmov 0.0|0.0   ;;  %vm1424_vm1 = vmmov 0   ;;  %v1425_v10 = vmov 0.0   ;;  %s1664_s0 = inlined_call_operand.vmem [shape: f32[64,16], index: 0, kind: input, shape index: {}]   ;;  %s1665_s1 = inlined_call_operand.vmem [shape: f32[16,128], index: 1, kind: input, shape index: {}]   ;;  %s1666_s2 = inlined_call_operand.vmem [shape: f32[32,128], index: 2, kind: input, shape index: {}]   ;;  %s1667_s3 = inlined_call_operand.vmem [shape: f32[1,128], index: 3, kind: input, shape index: {}]   ;;  %s1668_s4 = inlined_call_operand.vmem [shape: f32[32,16], index: 4, kind: input, shape index: {}]   ;;  %s1669_s5 = inlined_call_operand.vmem [shape: f32[1,16], index: 5, kind: input, shape index: {}]   ;;  %s1670_s6 = inlined_call_operand.hbm [shape: f32[8,16], index: 6, kind: output, shape index: {}]  }
   0x1   :  { %v24_v0 = vld [vmem:[%s1665_s1] sm:$0xff]  ;;  %v25_v1 = vld [vmem:[%s1665_s1 + $0x8] sm:$0xff]  ;;  %1275 = vmatprep.subr.bf16.mxu1 %v1423_v3  ;;  %v28_v8 = vld [vmem:[%s1666_s2 + $0x10] sm:$0xff]  ;;  %1180 = vmatprep.mubr.msk.f32.mxu1 %vm1424_vm1, %v1425_v10 }
   0x2   :  { %v26_v2 = vld [vmem:[%s1666_s2] sm:$0xff]  ;;  %v1271_v4 = vpack.c.bf16 %v25_v1, %v24_v0  ;;  %v27_v5 = vld [vmem:[%s1666_s2 + $0x8] sm:$0xff]  ;;  %v29_v9 = vld [vmem:[%s1666_s2 + $0x18] sm:$0xff] }
   0x3   :  { %v31_v6 = vld [vmem:[%s1664_s0] sm:$0xff]  ;;  %v1480_v7 = vpack.c.bf16 %v27_v5, %v26_v2 }
   0x4   :  { %1160 = vmatprep.mubr.msk.f32.mxu0 %vm45_vm0, %v31_v6 }
   0x5   :  { %11 = vsyncpa [#allocation3], 0  ;;  %1272 = vmatprep.subr.bf16.mxu0 %v1271_v4  ;;  %1277 = vmatpush3.bf16.msra.mxu1 %v1480_v7  ;;  %v32_v11 = vld [vmem:[%s1664_s0 + $0x8] sm:$0xff]  ;;  %v1495_v12 = vpack.c.bf16 %v29_v9, %v28_v8  ;;  %v1516_v13 = vld [vmem:[%s1667_s3] ss:$0 sm:$0xff]  ;;  %s1426_s13 = smov 64  }
   0x6   :  { %1274 = vmatpush3.bf16.msra.mxu0 %v1271_v4  ;;  %1278 = vmatprep.subr.bf16.mxu1 %v1423_v3  ;;  %s1427_s3 = smov 32   ;;  %vm175_vm2 = vcmask 261120   ;;  %v33_v48 = vld [vmem:[%s1664_s0 + $0x10] sm:$0xff]  ;;  %v34_v49 = vld [vmem:[%s1664_s0 + $0x18] sm:$0xff]  ;;  %v35_v50 = vld [vmem:[%s1664_s0 + $0x20] sm:$0xff] }
   0x7   :  { %1287 = vmatprep.subr.bf16.mxu0 %v1423_v3  ;;  %v36_v51 = vld [vmem:[%s1664_s0 + $0x28] sm:$0xff]  ;;  %v37_v52 = vld [vmem:[%s1664_s0 + $0x30] sm:$0xff]  ;;  %v38_v53 = vld [vmem:[%s1664_s0 + $0x38] sm:$0xff] }
   0x9   :  { %1161 = vmatmul.mubr.msk.f32.vlgmr.msra.gmra.mrb[0].mxu0 %vm45_vm0, %v32_v11  ;;  %1280 = vmatpush3.bf16.msra.mxu1 %v1495_v12 }
   0xa   :  { %1289 = vmatpush3.bf16.msra.mxu0 %v1480_v7  ;;  %1281 = vmatprep.subr.bf16.mxu1 %v1423_v3 }
   0xb   :  { %1290 = vmatprep.subr.bf16.mxu0 %v1423_v3  ;;  %1163 = vmatprep.mubr.msk.f32.mxu0 %vm45_vm0, %v33_v48 }
   0xc   :  { %1181 = vmatmul.mubr.f32.vlgmr.msra.gmra.mrb[0].mxu1 %v1425_v10 }
   0xd   :  { %1283 = vmatpush3.bf16.msra.mxu1 %v1480_v7  ;;  %1191 = vmatprep.mubr.msk.f32.mxu1 %vm1424_vm1, %v1425_v10 }
   0xe   :  { %1284 = vmatprep.subr.bf16.mxu1 %v1423_v3  ;;  %1292 = vmatpush3.bf16.msra.mxu0 %v1495_v12 }
   0xf   :  { %1299 = vmatprep.subr.bf16.mxu0 %v1423_v3  ;;  %1164 = vmatmul.mubr.msk.f32.gmra.mrb[2].mxu0 %vm45_vm0, %v34_v49 }
  0x10   :  { %1166 = vmatprep.mubr.msk.f32.mxu0 %vm45_vm0, %v35_v50 }
  0x11   :  { %1286 = vmatpush3.bf16.msra.mxu1 %v1495_v12 }
  0x12   :  { %1293 = vmatprep.subr.bf16.mxu1 %v1423_v3 }
  0x13   :  { %1167 = vmatmul.mubr.msk.f32.gmra.mrb[4].mxu0 %vm45_vm0, %v36_v51 }
  0x14   :  { %1169 = vmatprep.mubr.msk.f32.mxu0 %vm45_vm0, %v37_v52 }
  0x17   :  { %1170 = vmatmul.mubr.msk.f32.gmra.mrb[6].mxu0 %vm45_vm0, %v38_v53 }
  0x18   :  { %1202 = vmatprep.mubr.msk.f32.mxu0 %vm1424_vm1, %v1425_v10 }
  0xdc   :  { %v1162_v14 = vpop.f32.mrb[0].mxu0 }
  0xdd   :  { %v136_v15 = vpop.f32.mrb[1].mxu0  ;;  %v142_v34 = vadd.f32 %v1162_v14, %v1516_v13 }
  0xde   :  { %v137_v16 = vadd.f32 %v1516_v13, %v136_v15 }
  0xdf   :  { %v245_v17 = vpop.f32.mrb[0].mxu1 }
  0xe0   :  { %v249_v18 = vadd.f32 %v245_v17, %v137_v16  ;;  %v1182_v19 = vpop.f32.mrb[1].mxu1 }
  0xe2   :  { %1335 = vtanh.f32 %v249_v18  ;;  %v1084_v21 = vmul.f32 -1.442695, %v249_v18  ;;  %v1165_v57 = vpop.f32.mrb[2].mxu0 }
  0xe3   :  { %v146_v58 = vpop.f32.mrb[3].mxu0 }
  0xe4   :  { %1337 = vpow2.f32 %v1084_v21  ;;  %v147_v0 = vadd.f32 %v1516_v13, %v146_v58 }
  0xe6   :  { %v1561_v59 = vpop.f32.mrb[4].mxu0 }
  0xe7   :  { %v1563_v60 = vpop.f32.mrb[5].mxu0 }
  0xea   :  { %v1565_v61 = vpop.f32.mrb[6].mxu0 }
  0xeb   :  { %v1567_v62 = vpop.f32.mrb[7].mxu0 }
  0xec   :  { %v1336_v20 = vpop.eup %1335 }
  0xed   :  { %259 = vrot.lane.b32.xlu0 %v1336_v20, %s1426_s13 }
  0xee   :  { %v1338_v22 = vpop.eup %1337 }
  0xef   :  { %v253_v23 = vadd.f32 1.0, %v1338_v22 }
  0xf1   :  { %1339 = vrcp.f32 %v253_v23  ;;  %v152_v23 = vadd.f32 %v1165_v57, %v1516_v13 }
  0xfb   :  { %v1340_v24 = vpop.eup %1339 }
  0xfc   :  { %v257_v27 = vmul.f32 0.0, %v1340_v24 }
 0x15f   :  { %v260_v25 = vpop.permute.xlu0 %259 }
 0x160   :  { %v262_v26 = vmul.f32 %v1340_v24, %v260_v25 }
 0x162   :  { %264 = vrot.lane.b32.xlu0 %v262_v26, %s1427_s3 }
 0x1d4   :  { %v265_v28 = vpop.permute.xlu0 %264 }
 0x1d5   :  { %v267_v29 = vadd.f32 %v265_v28, %v257_v27 }
 0x1d7   :  { %1341 = vtanh.f32 %v267_v29 }
 0x1e1   :  { %v1342_v30 = vpop.eup %1341 }
 0x1e2   :  { %270 = vrot.lane.b32.xlu1 %v1342_v30, %s1426_s13 }
 0x254   :  { %v271_v31 = vpop.permute.xlu1 %270 }
 0x255   :  { %v273_v32 = vmul.f32 %v1340_v24, %v271_v31 }
 0x257   :  { %275 = vrot.lane.b32.xlu1 %v273_v32, %s1427_s3 }
 0x2c9   :  { %v276_v33 = vpop.permute.xlu1 %275 }
 0x2ca   :  { %1192 = vmatmul.mubr.msk.f32.vlgmr.msra.gmra.mrb[2].mxu1 %vm175_vm2, %v276_v33 }
 0x2cb   :  { %1295 = vmatpush3.bf16.msra.mxu1 %v1480_v7  ;;  %1213 = vmatprep.mubr.msk.f32.mxu1 %vm1424_vm1, %v1425_v10 }
 0x2cc   :  { %1296 = vmatprep.subr.bf16.mxu1 %v1423_v3 }
 0x2cf   :  { %1298 = vmatpush3.bf16.msra.mxu1 %v1495_v12 }
 0x2d0   :  { %1305 = vmatprep.subr.bf16.mxu1 %v1423_v3 }
 0x39d   :  { %v345_v35 = vpop.f32.mrb[2].mxu1 }
 0x39e   :  { %v349_v36 = vadd.f32 %v345_v35, %v142_v34  ;;  %v1193_v37 = vpop.f32.mrb[3].mxu1 }
 0x3a0   :  { %1343 = vtanh.f32 %v349_v36  ;;  %v1086_v39 = vmul.f32 -1.442695, %v349_v36 }
 0x3a2   :  { %1345 = vpow2.f32 %v1086_v39 }
 0x3aa   :  { %v1344_v38 = vpop.eup %1343 }
 0x3ab   :  { %359 = vrot.lane.b32.xlu0 %v1344_v38, %s1426_s13 }
 0x3ac   :  { %v1346_v40 = vpop.eup %1345 }
 0x3ad   :  { %v353_v41 = vadd.f32 1.0, %v1346_v40 }
 0x3af   :  { %1347 = vrcp.f32 %v353_v41  ;;  %v157_v41 = vadd.f32 %v1516_v13, %v1563_v60  ;;  %v162_v60 = vadd.f32 %v1561_v59, %v1516_v13 }
 0x3b9   :  { %v1348_v42 = vpop.eup %1347 }
 0x3ba   :  { %v357_v45 = vmul.f32 %v1348_v42, %v267_v29 }
 0x41d   :  { %v360_v43 = vpop.permute.xlu0 %359 }
 0x41e   :  { %v362_v44 = vmul.f32 %v1348_v42, %v360_v43 }
 0x420   :  { %364 = vrot.lane.b32.xlu1 %v362_v44, %s1427_s3 }
 0x492   :  { %v365_v46 = vpop.permute.xlu1 %364 }
 0x493   :  { %v367_v47 = vadd.f32 %v365_v46, %v357_v45 }
 0x495   :  { %1349 = vtanh.f32 %v367_v47 }
 0x49f   :  { %v1350_v54 = vpop.eup %1349 }
 0x4a0   :  { %370 = vrot.lane.b32.xlu0 %v1350_v54, %s1426_s13 }
 0x512   :  { %v371_v55 = vpop.permute.xlu0 %370 }
 0x513   :  { %v373_v56 = vmul.f32 %v1348_v42, %v371_v55 }
 0x515   :  { %375 = vrot.lane.b32.xlu1 %v373_v56, %s1427_s3 }
 0x587   :  { %v376_v63 = vpop.permute.xlu1 %375 }
 0x588   :  { %1203 = vmatmul.mubr.msk.f32.vlgmr.msra.gmra.mrb[8].mxu0 %vm175_vm2, %v376_v63 }
 0x589   :  { %1301 = vmatpush3.bf16.msra.mxu0 %v1480_v7  ;;  %1224 = vmatprep.mubr.msk.f32.mxu0 %vm1424_vm1, %v1425_v10 }
 0x58a   :  { %1302 = vmatprep.subr.bf16.mxu0 %v1423_v3 }
 0x58d   :  { %1304 = vmatpush3.bf16.msra.mxu0 %v1495_v12 }
 0x58e   :  { %1311 = vmatprep.subr.bf16.mxu0 %v1423_v3 }
 0x65b   :  { %v445_v1 = vpop.f32.mrb[8].mxu0 }
 0x65c   :  { %v449_v2 = vadd.f32 %v445_v1, %v147_v0  ;;  %v1204_v4 = vpop.f32.mrb[9].mxu0 }
 0x65e   :  { %1351 = vtanh.f32 %v449_v2  ;;  %v1088_v6 = vmul.f32 -1.442695, %v449_v2 }
 0x660   :  { %1353 = vpow2.f32 %v1088_v6 }
 0x668   :  { %v1352_v5 = vpop.eup %1351 }
 0x669   :  { %459 = vrot.lane.b32.xlu0 %v1352_v5, %s1426_s13 }
 0x66a   :  { %v1354_v8 = vpop.eup %1353 }
 0x66b   :  { %v453_v9 = vadd.f32 1.0, %v1354_v8 }
 0x66d   :  { %1355 = vrcp.f32 %v453_v9 }
 0x677   :  { %v1356_v11 = vpop.eup %1355 }
 0x678   :  { %v457_v16 = vmul.f32 %v1356_v11, %v367_v47 }
 0x6db   :  { %v460_v14 = vpop.permute.xlu0 %459 }
 0x6dc   :  { %v462_v15 = vmul.f32 %v1356_v11, %v460_v14 }
 0x6de   :  { %464 = vrot.lane.b32.xlu1 %v462_v15, %s1427_s3 }
 0x750   :  { %v465_v17 = vpop.permute.xlu1 %464 }
 0x751   :  { %v467_v18 = vadd.f32 %v465_v17, %v457_v16 }
 0x753   :  { %1357 = vtanh.f32 %v467_v18 }
 0x75d   :  { %v1358_v19 = vpop.eup %1357 }
 0x75e   :  { %470 = vrot.lane.b32.xlu0 %v1358_v19, %s1426_s13 }
 0x7d0   :  { %v471_v20 = vpop.permute.xlu0 %470 }
 0x7d1   :  { %v473_v21 = vmul.f32 %v1356_v11, %v471_v20 }
 0x7d3   :  { %475 = vrot.lane.b32.xlu1 %v473_v21, %s1427_s3 }
 0x845   :  { %v476_v22 = vpop.permute.xlu1 %475 }
 0x846   :  { %1214 = vmatmul.mubr.msk.f32.vlgmr.msra.gmra.mrb[4].mxu1 %vm175_vm2, %v476_v22 }
 0x847   :  { %1307 = vmatpush3.bf16.msra.mxu1 %v1480_v7  ;;  %1235 = vmatprep.mubr.msk.f32.mxu1 %vm1424_vm1, %v1425_v10 }
 0x848   :  { %1308 = vmatprep.subr.bf16.mxu1 %v1423_v3 }
 0x84b   :  { %1310 = vmatpush3.bf16.msra.mxu1 %v1495_v12 }
 0x84c   :  { %1317 = vmatprep.subr.bf16.mxu1 %v1423_v3 }
 0x919   :  { %v545_v24 = vpop.f32.mrb[4].mxu1 }
 0x91a   :  { %v549_v25 = vadd.f32 %v545_v24, %v152_v23  ;;  %v1215_v26 = vpop.f32.mrb[5].mxu1 }
 0x91c   :  { %1359 = vtanh.f32 %v549_v25  ;;  %v1090_v28 = vmul.f32 -1.442695, %v549_v25 }
 0x91e   :  { %1361 = vpow2.f32 %v1090_v28 }
 0x926   :  { %v1360_v27 = vpop.eup %1359 }
 0x927   :  { %559 = vrot.lane.b32.xlu0 %v1360_v27, %s1426_s13 }
 0x928   :  { %v1362_v29 = vpop.eup %1361 }
 0x929   :  { %v553_v30 = vadd.f32 1.0, %v1362_v29 }
 0x92b   :  { %1363 = vrcp.f32 %v553_v30 }
 0x935   :  { %v1364_v31 = vpop.eup %1363 }
 0x936   :  { %v557_v34 = vmul.f32 %v1364_v31, %v467_v18  ;;  %v167_v18 = vadd.f32 %v1516_v13, %v1567_v62 }
 0x999   :  { %v560_v32 = vpop.permute.xlu0 %559 }
 0x99a   :  { %v562_v33 = vmul.f32 %v1364_v31, %v560_v32 }
 0x99c   :  { %564 = vrot.lane.b32.xlu1 %v562_v33, %s1427_s3 }
 0xa0e   :  { %v565_v35 = vpop.permute.xlu1 %564 }
 0xa0f   :  { %v567_v36 = vadd.f32 %v565_v35, %v557_v34  ;;  %v172_v34 = vadd.f32 %v1565_v61, %v1516_v13  ;;  %v974_v61 = vld [vmem:[%s1668_s4] sm:$0xff] }
 0xa11   :  { %1365 = vtanh.f32 %v567_v36 }
 0xa1b   :  { %v1366_v37 = vpop.eup %1365 }
 0xa1c   :  { %570 = vrot.lane.b32.xlu0 %v1366_v37, %s1426_s13 }
 0xa8e   :  { %v571_v38 = vpop.permute.xlu0 %570 }
 0xa8f   :  { %v573_v39 = vmul.f32 %v1364_v31, %v571_v38 }
 0xa91   :  { %575 = vrot.lane.b32.xlu1 %v573_v39, %s1427_s3 }
 0xb03   :  { %v576_v40 = vpop.permute.xlu1 %575 }
 0xb04   :  { %1225 = vmatmul.mubr.msk.f32.vlgmr.msra.gmra.mrb[10].mxu0 %vm175_vm2, %v576_v40 }
 0xb05   :  { %1313 = vmatpush3.bf16.msra.mxu0 %v1480_v7  ;;  %1246 = vmatprep.mubr.msk.f32.mxu0 %vm1424_vm1, %v1425_v10 }
 0xb06   :  { %1314 = vmatprep.subr.bf16.mxu0 %v1423_v3 }
 0xb09   :  { %1316 = vmatpush3.bf16.msra.mxu0 %v1495_v12 }
 0xb0a   :  { %1323 = vmatprep.subr.bf16.mxu0 %v1423_v3 }
 0xbd7   :  { %v645_v42 = vpop.f32.mrb[10].mxu0 }
 0xbd8   :  { %v649_v43 = vadd.f32 %v645_v42, %v157_v41  ;;  %v1226_v44 = vpop.f32.mrb[11].mxu0 }
 0xbda   :  { %1367 = vtanh.f32 %v649_v43  ;;  %v1092_v46 = vmul.f32 -1.442695, %v649_v43 }
 0xbdc   :  { %1369 = vpow2.f32 %v1092_v46 }
 0xbe4   :  { %v1368_v45 = vpop.eup %1367 }
 0xbe5   :  { %659 = vrot.lane.b32.xlu0 %v1368_v45, %s1426_s13 }
 0xbe6   :  { %v1370_v47 = vpop.eup %1369 }
 0xbe7   :  { %v653_v48 = vadd.f32 1.0, %v1370_v47  ;;  %v975_v47 = vld [vmem:[%s1668_s4 + $0x8] sm:$0xff] }
 0xbe9   :  { %1371 = vrcp.f32 %v653_v48  ;;  %v976_v48 = vld [vmem:[%s1668_s4 + $0x10] sm:$0xff] }
 0xbf3   :  { %v1372_v49 = vpop.eup %1371 }
 0xbf4   :  { %v657_v52 = vmul.f32 %v1372_v49, %v567_v36 }
 0xc57   :  { %v660_v50 = vpop.permute.xlu0 %659 }
 0xc58   :  { %v662_v51 = vmul.f32 %v1372_v49, %v660_v50  ;;  %v977_v50 = vld [vmem:[%s1668_s4 + $0x18] sm:$0xff]  ;;  %s1428_s4 = smov [#allocation2]  }
 0xc59   :  { %s1067_s10 = sshll.u32 %s1428_s4, 4  ;;  %s1068_s10 = int_to_ptr.vmem [resolvable:$true] %s1067_s10 }
 0xc5a   :  { %664 = vrot.lane.b32.xlu1 %v662_v51, %s1427_s3  ;;  %v1327_v51 = vpack.c.bf16 %v977_v50, %v976_v48  ;;  %s1399_s11 = scalar_lea.vmem %s1068_s10, 128  ;;  %p1404_p1 = scmp.lt.s32.totalorder %s1068_s10, %s1068_s10 }
 0xc5b   :  { %p1400_p0 = scmp.ne.s32.totalorder %s1068_s10, %s1399_s11  ;;  %p1405_p2 = scmp.lt.s32.totalorder %s1399_s11, %s1399_s11 }
 0xc5d   :  { %p1406_p3 = por %p1405_p2, %p1404_p1 }
 0xc5f   :  { %p1407_p4 = pnand %p1406_p3, %p1400_p0 }
 0xccc   :  { %v665_v53 = vpop.permute.xlu1 %664 }
 0xccd   :  { %v667_v54 = vadd.f32 %v665_v53, %v657_v52 }
 0xccf   :  { %1373 = vtanh.f32 %v667_v54 }
 0xcd9   :  { %v1374_v55 = vpop.eup %1373 }
 0xcda   :  { %670 = vrot.lane.b32.xlu0 %v1374_v55, %s1426_s13 }
 0xd4c   :  { %v671_v56 = vpop.permute.xlu0 %670 }
 0xd4d   :  { %v673_v57 = vmul.f32 %v1372_v49, %v671_v56  ;;  %v1324_v49 = vpack.c.bf16 %v975_v47, %v974_v61  ;;  %v1099_v56 = vld [vmem:[%s1669_s5] ss:$0 sm:$0xff] }
 0xd4f   :  { %675 = vrot.lane.b32.xlu1 %v673_v57, %s1427_s3 }
 0xdc1   :  { %v676_v58 = vpop.permute.xlu1 %675 }
 0xdc2   :  { %1236 = vmatmul.mubr.msk.f32.vlgmr.msra.gmra.mrb[6].mxu1 %vm175_vm2, %v676_v58 }
 0xdc3   :  { %1319 = vmatpush3.bf16.msra.mxu1 %v1480_v7  ;;  %1257 = vmatprep.mubr.msk.f32.mxu1 %vm1424_vm1, %v1425_v10 }
 0xdc4   :  { %1320 = vmatprep.subr.bf16.mxu1 %v1423_v3 }
 0xdc7   :  { %1322 = vmatpush3.bf16.msra.mxu1 %v1495_v12 }
 0xe95   :  { %v745_v63 = vpop.f32.mrb[6].mxu1 }
 0xe96   :  { %v749_v0 = vadd.f32 %v745_v63, %v162_v60  ;;  %v1237_v1 = vpop.f32.mrb[7].mxu1 }
 0xe98   :  { %1375 = vtanh.f32 %v749_v0  ;;  %v1094_v4 = vmul.f32 -1.442695, %v749_v0 }
 0xe9a   :  { %1377 = vpow2.f32 %v1094_v4 }
 0xea2   :  { %v1376_v2 = vpop.eup %1375 }
 0xea3   :  { %759 = vrot.lane.b32.xlu0 %v1376_v2, %s1426_s13 }
 0xea4   :  { %v1378_v7 = vpop.eup %1377 }
 0xea5   :  { %v753_v5 = vadd.f32 1.0, %v1378_v7 }
 0xea7   :  { %1379 = vrcp.f32 %v753_v5 }
 0xeb1   :  { %v1380_v6 = vpop.eup %1379 }
 0xeb2   :  { %v757_v12 = vmul.f32 %v1380_v6, %v667_v54 }
 0xf15   :  { %v760_v8 = vpop.permute.xlu0 %759 }
 0xf16   :  { %v762_v9 = vmul.f32 %v1380_v6, %v760_v8 }
 0xf18   :  { %764 = vrot.lane.b32.xlu1 %v762_v9, %s1427_s3 }
 0xf8a   :  { %v765_v11 = vpop.permute.xlu1 %764 }
 0xf8b   :  { %v767_v59 = vadd.f32 %v765_v11, %v757_v12 }
 0xf8d   :  { %1381 = vtanh.f32 %v767_v59 }
 0xf97   :  { %v1382_v14 = vpop.eup %1381 }
 0xf98   :  { %770 = vrot.lane.b32.xlu0 %v1382_v14, %s1426_s13 }
0x100a   :  { %v771_v15 = vpop.permute.xlu0 %770 }
0x100b   :  { %v773_v16 = vmul.f32 %v1380_v6, %v771_v15 }
0x100d   :  { %775 = vrot.lane.b32.xlu1 %v773_v16, %s1427_s3 }
0x107f   :  { %v776_v17 = vpop.permute.xlu1 %775 }
0x1080   :  { %1247 = vmatmul.mubr.msk.f32.vlgmr.msra.gmra.mrb[12].mxu0 %vm175_vm2, %v776_v17 }
0x1081   :  { %1268 = vmatprep.mubr.msk.f32.mxu0 %vm1424_vm1, %v1425_v10  ;;  %1325 = vmatpush3.bf16.msra.mxu0 %v1324_v49 }
0x1082   :  { %1326 = vmatprep.subr.bf16.mxu0 %v1423_v3 }
0x1085   :  { %1328 = vmatpush3.bf16.msra.mxu0 %v1327_v51 }
0x1153   :  { %v845_v19 = vpop.f32.mrb[12].mxu0 }
0x1154   :  { %v849_v20 = vadd.f32 %v845_v19, %v167_v18  ;;  %v1248_v21 = vpop.f32.mrb[13].mxu0 }
0x1156   :  { %1383 = vtanh.f32 %v849_v20  ;;  %v1096_v23 = vmul.f32 -1.442695, %v849_v20 }
0x1158   :  { %1385 = vpow2.f32 %v1096_v23 }
0x1160   :  { %v1384_v22 = vpop.eup %1383 }
0x1161   :  { %859 = vrot.lane.b32.xlu0 %v1384_v22, %s1426_s13 }
0x1162   :  { %v1386_v24 = vpop.eup %1385 }
0x1163   :  { %v853_v25 = vadd.f32 1.0, %v1386_v24 }
0x1165   :  { %1387 = vrcp.f32 %v853_v25 }
0x116f   :  { %v1388_v26 = vpop.eup %1387 }
0x1170   :  { %v857_v10 = vmul.f32 %v1388_v26, %v767_v59 }
0x11d3   :  { %v860_v27 = vpop.permute.xlu0 %859 }
0x11d4   :  { %v862_v28 = vmul.f32 %v1388_v26, %v860_v27 }
0x11d6   :  { %864 = vrot.lane.b32.xlu1 %v862_v28, %s1427_s3 }
0x1248   :  { %v865_v29 = vpop.permute.xlu1 %864 }
0x1249   :  { %v867_v62 = vadd.f32 %v865_v29, %v857_v10 }
0x124b   :  { %1389 = vtanh.f32 %v867_v62 }
0x1255   :  { %v1390_v30 = vpop.eup %1389 }
0x1256   :  { %870 = vrot.lane.b32.xlu0 %v1390_v30, %s1426_s13 }
0x12c8   :  { %v871_v31 = vpop.permute.xlu0 %870 }
0x12c9   :  { %v873_v32 = vmul.f32 %v1388_v26, %v871_v31 }
0x12cb   :  { %875 = vrot.lane.b32.xlu1 %v873_v32, %s1427_s3 }
0x133d   :  { %v876_v33 = vpop.permute.xlu1 %875 }
0x133e   :  { %1258 = vmatmul.mubr.msk.f32.vlgmr.msra.gmra.mrb[8].mxu1 %vm175_vm2, %v876_v33 }
0x1411   :  { %v945_v35 = vpop.f32.mrb[8].mxu1 }
0x1412   :  { %v949_v36 = vadd.f32 %v945_v35, %v172_v34  ;;  %v1259_v37 = vpop.f32.mrb[9].mxu1 }
0x1414   :  { %1391 = vtanh.f32 %v949_v36  ;;  %v1098_v39 = vmul.f32 -1.442695, %v949_v36 }
0x1416   :  { %1393 = vpow2.f32 %v1098_v39 }
0x141e   :  { %v1392_v38 = vpop.eup %1391 }
0x141f   :  { %959 = vrot.lane.b32.xlu0 %v1392_v38, %s1426_s13 }
0x1420   :  { %v1394_v40 = vpop.eup %1393 }
0x1421   :  { %v953_v41 = vadd.f32 1.0, %v1394_v40 }
0x1423   :  { %1395 = vrcp.f32 %v953_v41 }
0x142d   :  { %v1396_v42 = vpop.eup %1395 }
0x142e   :  { %v957_v45 = vmul.f32 %v1396_v42, %v867_v62 }
0x1491   :  { %v960_v43 = vpop.permute.xlu0 %959 }
0x1492   :  { %v962_v44 = vmul.f32 %v1396_v42, %v960_v43 }
0x1494   :  { %964 = vrot.lane.b32.xlu1 %v962_v44, %s1427_s3 }
0x1506   :  { %v965_v46 = vpop.permute.xlu1 %964 }
0x1507   :  { %v967_v13 = vadd.f32 %v965_v46, %v957_v45 }
0x1509   :  { %1397 = vtanh.f32 %v967_v13 }
0x1513   :  { %v1398_v52 = vpop.eup %1397 }
0x1514   :  { %970 = vrot.lane.b32.xlu0 %v1398_v52, %s1426_s13 }
0x1586   :  { %v971_v53 = vpop.permute.xlu0 %970 }
0x1587   :  { %v973_v54 = vmul.f32 %v1396_v42, %v971_v53 }
0x1589   :  { %986 = vrot.lane.b32.xlu1 %v973_v54, %s1427_s3 }
0x15fb   :  { %v987_v55 = vpop.permute.xlu1 %986 }
0x15fc   :  { %1269 = vmatmul.mubr.msk.f32.vlgmr.msra.gmra.mrb[14].mxu0 %vm175_vm2, %v987_v55 }
0x16cf   :  { %v1056_v57 = vpop.f32.mrb[14].mxu0 }
0x16d0   :  { %v1057_v58 = vadd.f32 %v1099_v56, %v1056_v57  ;;  %v1270_v3 = vpop.f32.mrb[15].mxu0 }
0x16d2   :  { %1060 = vst.msk [vmem:[#allocation2] sm:$0xff] %vm45_vm0, %v1057_v58 }
0x16d3   :  { %1410 = shalt.err (!%p1407_p4)
}
0x16d4   :  { %s1411_s13 = scalar_lea.hbm %s1670_s6, 128 }
0x16d5   :  { %p1412_p5 = scmp.ne.s32.totalorder %s1670_s6, %s1411_s13  ;;  %p1415_p6 = scmp.lt.u32.totalorder %s1411_s13, %s1670_s6 }
0x16d7   :  { %p1417_p7 = pnand %p1415_p6, %p1412_p5 }
0x16d9   :  { %1420 = shalt.err (!%p1417_p7)
}
0x16da   :  { %1070 = dma.vmem_to_hbm [thread:$0]  %s1068_s10, 128, %s1670_s6, [#allocation3]  }
0x16db   :  { %1421 = dma.done.wait [#allocation3], 128  }
0x16dc   :  { %1422 = vsyncadd [#allocation3], 4294967168 }
0x16dd   :  { %1074 = vsyncpa [#allocation3], 1 }

</bundles_post_ra>
